<compile_context>
chip_gen: v7x
topology: tpu7x:2x2x1
jax: 0.10.0
libtpu: 0.0.40
codegen_flags: <defaults>
</compile_context>

<pallas_src>
import functools

import jax
import jax.numpy as jnp
from jax import lax
from jax.experimental import pallas as pl
from jax.experimental.pallas import tpu as pltpu

BN_EPS = 1e-5


def sa_layer_kernel(x_ref, xkey_ref, wq_ref, wk_ref, wv_ref, wt_ref, b_ref,
                    xfinal_ref, attn_ref, *, tb, n, c4):
    f32 = jnp.float32

    x2d = x_ref[...]                       # (tb*N, C)  (possibly bf16)
    xkey = xkey_ref[...]                   # (tb, C)    f32

    bq = b_ref[0:1, 0:c4]                  # (1, C4)
    bk = b_ref[1:2, 0:c4]                  # (1, C4)
    bv = b_ref[2:3, :]                     # (1, C)
    bt = b_ref[3:4, :]                     # (1, C)   trans_conv bias with BN folded

    # ---- projections: big MXU matmuls over all tb*N rows, f32 accumulation ----
    xq = jnp.tanh(jnp.dot(x2d, wq_ref[...], preferred_element_type=f32) + bq)   # (tb*N, C4)
    xv = jnp.dot(x2d, wv_ref[...], preferred_element_type=f32) + bv             # (tb*N, C)
    xk = jnp.tanh(jnp.dot(xkey, wk_ref[...], preferred_element_type=f32) + bk)  # (tb, C4)

    # ---- energy as a lane-major (tb, tb*N) row block on the MXU ----------------
    # e_full[b, j] = <tanh(k_b), tanh(q_j)>; only columns b*N <= j < (b+1)*N are
    # this batch element's own points.
    e_full = lax.dot_general(xk, xq, (((1,), (1,)), ((), ())),
                             preferred_element_type=f32)                         # (tb, tb*N)

    row_b = lax.broadcasted_iota(jnp.int32, (tb, tb * n), 0)
    col_j = lax.broadcasted_iota(jnp.int32, (tb, tb * n), 1)
    lo = row_b * n
    valid = jnp.logical_and(col_j >= lo, col_j < lo + n)

    # masked softmax along the lane axis; off-block entries underflow to exact 0.
    e_m = jnp.where(valid, e_full, -1e30)
    m = jnp.max(e_m, axis=-1, keepdims=True)                                     # (tb, 1)
    p = jnp.exp(e_m - m)                                                         # (tb, tb*N)
    attn_full = p / jnp.sum(p, axis=-1, keepdims=True)                           # (tb, tb*N)

    # ---- x_r = attention @ x_v on the MXU; off-block zeros kill cross-batch terms
    x_r = jnp.dot(attn_full, xv, preferred_element_type=f32)                     # (tb, C)

    # ---- trans_conv (eval-mode BatchNorm folded into wt/bt) + ReLU + residual --
    t = xkey - x_r
    u = jnp.dot(t, wt_ref[...], preferred_element_type=f32) + bt                 # (tb, C)
    xfinal_ref[...] = (xkey + jnp.maximum(u, 0.0)).astype(xfinal_ref.dtype)

    # ---- gather each batch's own attention row into the dense (tb, N) output ---
    # select[j, nn] = 1 iff j's within-block position == nn (tiled identity),
    # built from 2-D iotas + compares only (no integer div/mod, no reshape).
    jj = lax.broadcasted_iota(jnp.int32, (tb * n, n), 0)
    nn = lax.broadcasted_iota(jnp.int32, (tb * n, n), 1)
    sel = jj == nn
    for b in range(1, tb):
        sel = jnp.logical_or(sel, jj == nn + b * n)
    select = sel.astype(f32)                                                     # (tb*N, N)
    attn_ref[...] = jnp.dot(attn_full, select,
                            preferred_element_type=f32).astype(attn_ref.dtype)


def sa_layer_forward(x, x_key, params, *, tb=8, mxu_dtype=jnp.float32):
    """x: (B, C, N), x_key: (B, C, 1)  ->  (x_final (B, C), attention (B, N)).

    mxu_dtype=jnp.bfloat16 is a valid choice on v6e/v7x (halves HBM traffic on x,
    the only O(B*N*C) operand); all non-MXU math stays float32.
    """
    B, C, N = x.shape
    assert C % 4 == 0
    C4 = C // 4
    f32 = jnp.float32

    tb = max(1, min(tb, B))
    Bp = pl.cdiv(B, tb) * tb

    # Fuse the NCW->NWC transpose with the (optional) MXU downcast: one XLA pass
    # over x, the dominant HBM operand.
    x_bnc = jnp.transpose(x, (0, 2, 1)).astype(mxu_dtype)      # (B, N, C)
    xkey_bc = x_key[:, :, 0].astype(f32)                        # (B, C)
    if Bp != B:
        x_bnc = jnp.pad(x_bnc, ((0, Bp - B), (0, 0), (0, 0)))
        xkey_bc = jnp.pad(xkey_bc, ((0, Bp - B), (0, 0)))
    x2d = x_bnc.reshape(Bp * N, C)                              # (Bp*N, C)

    # kernel-size-1 convs as (C_in, C_out) matmul weights
    wqT = params["wq"].T.astype(mxu_dtype)                      # (C, C4)
    wkT = params["wk"].T.astype(f32)                            # (C, C4) tiny; keep f32
    wvT = params["wv"].T.astype(mxu_dtype)                      # (C, C)

    # Fold eval-mode BatchNorm into trans_conv: wt' = wt^T * scale, bt' folded.
    inv_std = 1.0 / jnp.sqrt(params["rvar"].astype(f32) + BN_EPS)
    scale = params["gamma"].astype(f32) * inv_std                              # (C,)
    wtT_f = (params["wt"].T.astype(f32) * scale[None, :]).astype(f32)          # (C, C)
    bt_f = (params["bt"].astype(f32) - params["rmean"].astype(f32)) * scale \
        + params["beta"].astype(f32)                                           # (C,)

    # Consolidate all small per-channel vectors into a single (4, C) input.
    biases = jnp.zeros((4, C), f32)
    biases = biases.at[0, :C4].set(params["bq"].astype(f32))
    biases = biases.at[1, :C4].set(params["bk"].astype(f32))
    biases = biases.at[2, :].set(params["bv"].astype(f32))
    biases = biases.at[3, :].set(bt_f)

    kernel = functools.partial(sa_layer_kernel, tb=tb, n=N, c4=C4)

    grid_spec = pltpu.PrefetchScalarGridSpec(
        num_scalar_prefetch=0,
        grid=(Bp // tb,),
        in_specs=[
            pl.BlockSpec((tb * N, C), lambda b: (b, 0)),   # x rows for this batch block
            pl.BlockSpec((tb, C), lambda b: (b, 0)),       # x_key rows
            pl.BlockSpec((C, C4), lambda b: (0, 0)),       # q_conv weight
            pl.BlockSpec((C, C4), lambda b: (0, 0)),       # k_conv weight
            pl.BlockSpec((C, C), lambda b: (0, 0)),        # v_conv weight
            pl.BlockSpec((C, C), lambda b: (0, 0)),        # trans_conv weight (BN folded)
            pl.BlockSpec((4, C), lambda b: (0, 0)),        # consolidated biases
        ],
        out_specs=[
            pl.BlockSpec((tb, C), lambda b: (b, 0)),       # x_final
            pl.BlockSpec((tb, N), lambda b: (b, 0)),       # attention
        ],
    )

    x_final, attention = pl.pallas_call(
        kernel,
        out_shape=(jax.ShapeDtypeStruct((Bp, C), f32),
                   jax.ShapeDtypeStruct((Bp, N), f32)),
        grid_spec=grid_spec,
        compiler_params=pltpu.CompilerParams(
            dimension_semantics=("parallel",)),   # batch blocks are independent (v7x 2 TCs)
    )(x2d, xkey_bc, wqT, wkT, wvT, wtT_f, biases)

    return x_final[:B], attention[:B]


def sa_layer_reference(x, x_key, p):
    """Pure-JAX reference matching the PyTorch forward (eval-mode BN, unfolded)."""
    xq = jnp.einsum('oc,bcn->bno', p["wq"], x) + p["bq"][None, None, :]      # (B, N, C4)
    xk = jnp.einsum('oc,bcm->bom', p["wk"], x_key) + p["bk"][None, :, None]  # (B, C4, 1)
    xv = jnp.einsum('oc,bcn->bon', p["wv"], x) + p["bv"][None, :, None]      # (B, C, N)
    energy = jnp.einsum('bno,bom->bnm', jnp.tanh(xq), jnp.tanh(xk))[..., 0]  # (B, N)
    attention = jax.nn.softmax(energy, axis=-1)
    x_r = jnp.einsum('bcn,bn->bc', xv, attention)[..., None]                 # (B, C, 1)
    t = x_key - x_r
    u = jnp.einsum('oc,bcm->bom', p["wt"], t) + p["bt"][None, :, None]
    bn = ((u - p["rmean"][None, :, None])
          / jnp.sqrt(p["rvar"][None, :, None] + BN_EPS)
          * p["gamma"][None, :, None] + p["beta"][None, :, None])
    x_final = (x_key + jnp.maximum(bn, 0.0))[..., 0]
    return x_final, attention


def init_params(key, channels):
    C = channels
    C4 = C // 4
    ks = jax.random.split(key, 12)
    bound = 1.0 / jnp.sqrt(float(C))  # PyTorch Conv1d default init bound (fan_in = C * 1)

    def u(k, shape, lo=-bound, hi=bound):
        return jax.random.uniform(k, shape, jnp.float32, lo, hi)

    return {
        "wq": u(ks[0], (C4, C)), "bq": u(ks[1], (C4,)),
        "wk": u(ks[2], (C4, C)), "bk": u(ks[3], (C4,)),
        "wv": u(ks[4], (C, C)),  "bv": u(ks[5], (C,)),
        "wt": u(ks[6], (C, C)),  "bt": u(ks[7], (C,)),
        # non-trivial eval-mode BatchNorm params/stats to exercise the BN fold
        "gamma": u(ks[8], (C,), 0.5, 1.5),
        "beta":  u(ks[9], (C,), -0.2, 0.2),
        "rmean": u(ks[10], (C,), -0.2, 0.2),
        "rvar":  u(ks[11], (C,), 0.5, 1.5),
    }


if __name__ == "__main__":
    B, C, N = 2, 32, 16  # batch, channels, number of points
    key = jax.random.PRNGKey(0)
    k_param, k_x, k_xk = jax.random.split(key, 3)

    params = init_params(k_param, C)
    x = jax.random.normal(k_x, (B, C, N), jnp.float32)        # PyTorch layout (B, C, N)
    x_key = jax.random.normal(k_xk, (B, C, 1), jnp.float32)   # PyTorch layout (B, C, 1)

    x_final, attention = sa_layer_forward(x, x_key, params)
    jax.block_until_ready((x_final, attention))

    x_final_ref, attention_ref = sa_layer_reference(x, x_key, params)
    assert x_final.shape == (B, C) and attention.shape == (B, N)
    assert jnp.allclose(x_final, x_final_ref, rtol=1e-4, atol=1e-5), (
        "x_final max abs diff", float(jnp.max(jnp.abs(x_final - x_final_ref))))
    assert jnp.allclose(attention, attention_ref, rtol=1e-4, atol=1e-5), (
        "attention max abs diff", float(jnp.max(jnp.abs(attention - attention_ref))))

    print("KERNEL_OK")
</pallas_src>

<mosaic_0001>
module attributes {stable_mosaic.version = 11 : i64} {
  func.func @sa_layer_kernel(%arg0: i32, %arg1: memref<32x32xf32, #tpu.memory_space<vmem>>, %arg2: memref<2x32xf32, #tpu.memory_space<vmem>>, %arg3: memref<32x8xf32, #tpu.memory_space<vmem>>, %arg4: memref<32x8xf32, #tpu.memory_space<vmem>>, %arg5: memref<32x32xf32, #tpu.memory_space<vmem>>, %arg6: memref<32x32xf32, #tpu.memory_space<vmem>>, %arg7: memref<4x32xf32, #tpu.memory_space<vmem>>, %arg8: memref<2x32xf32, #tpu.memory_space<vmem>>, %arg9: memref<2x16xf32, #tpu.memory_space<vmem>>) attributes {dimension_semantics = [#tpu.dimension_semantics<parallel>], iteration_bounds = array<i64: 1>, scalar_prefetch = 0 : i64, scratch_operands = 0 : i64, tpu.core_type = #tpu.core_type<tc>, window_params = [{transform_indices = @transform_0, window_bounds = array<i64: 32, 32>}, {transform_indices = @transform_1, window_bounds = array<i64: 2, 32>}, {pipeline_mode = #tpu.pipeline_mode<synchronous>, transform_indices = @transform_2, window_bounds = array<i64: 32, 8>}, {pipeline_mode = #tpu.pipeline_mode<synchronous>, transform_indices = @transform_3, window_bounds = array<i64: 32, 8>}, {pipeline_mode = #tpu.pipeline_mode<synchronous>, transform_indices = @transform_4, window_bounds = array<i64: 32, 32>}, {pipeline_mode = #tpu.pipeline_mode<synchronous>, transform_indices = @transform_5, window_bounds = array<i64: 32, 32>}, {pipeline_mode = #tpu.pipeline_mode<synchronous>, transform_indices = @transform_6, window_bounds = array<i64: 4, 32>}, {transform_indices = @transform_7, window_bounds = array<i64: 2, 32>}, {transform_indices = @transform_8, window_bounds = array<i64: 2, 16>}]} {
    %c0 = arith.constant 0 : index
    %c0_0 = arith.constant 0 : index
    %0 = vector.load %arg1[%c0, %c0_0] : memref<32x32xf32, #tpu.memory_space<vmem>>, vector<32x32xf32>
    %c0_1 = arith.constant 0 : index
    %c0_2 = arith.constant 0 : index
    %1 = vector.load %arg2[%c0_1, %c0_2] : memref<2x32xf32, #tpu.memory_space<vmem>>, vector<2x32xf32>
    %c0_3 = arith.constant 0 : index
    %c0_4 = arith.constant 0 : index
    %2 = vector.load %arg7[%c0_3, %c0_4] : memref<4x32xf32, #tpu.memory_space<vmem>>, vector<1x8xf32>
    %c1 = arith.constant 1 : index
    %c0_5 = arith.constant 0 : index
    %3 = vector.load %arg7[%c1, %c0_5] : memref<4x32xf32, #tpu.memory_space<vmem>>, vector<1x8xf32>
    %c2 = arith.constant 2 : index
    %c0_6 = arith.constant 0 : index
    %4 = vector.load %arg7[%c2, %c0_6] : memref<4x32xf32, #tpu.memory_space<vmem>>, vector<1x32xf32>
    %c3 = arith.constant 3 : index
    %c0_7 = arith.constant 0 : index
    %5 = vector.load %arg7[%c3, %c0_7] : memref<4x32xf32, #tpu.memory_space<vmem>>, vector<1x32xf32>
    %c0_8 = arith.constant 0 : index
    %c0_9 = arith.constant 0 : index
    %6 = vector.load %arg3[%c0_8, %c0_9] : memref<32x8xf32, #tpu.memory_space<vmem>>, vector<32x8xf32>
    %cst = arith.constant dense<0.000000e+00> : vector<32x8xf32>
    %7 = tpu.matmul %0, %6, %cst {dimension_numbers = #tpu.dot_dimension_numbers<[1], [0], [0], [1], [0, 0, 1, 1], [], []>} : vector<32x32xf32>, vector<32x8xf32>, vector<32x8xf32> -> vector<32x8xf32>
    %8 = vector.broadcast %2 : vector<1x8xf32> to vector<32x8xf32>
    %9 = arith.addf %7, %8 : vector<32x8xf32>
    %10 = math.tanh %9 : vector<32x8xf32>
    %c0_10 = arith.constant 0 : index
    %c0_11 = arith.constant 0 : index
    %11 = vector.load %arg5[%c0_10, %c0_11] : memref<32x32xf32, #tpu.memory_space<vmem>>, vector<32x32xf32>
    %cst_12 = arith.constant dense<0.000000e+00> : vector<32x32xf32>
    %12 = tpu.matmul %0, %11, %cst_12 {dimension_numbers = #tpu.dot_dimension_numbers<[1], [0], [0], [1], [0, 0, 1, 1], [], []>} : vector<32x32xf32>, vector<32x32xf32>, vector<32x32xf32> -> vector<32x32xf32>
    %13 = vector.broadcast %4 : vector<1x32xf32> to vector<32x32xf32>
    %14 = arith.addf %12, %13 : vector<32x32xf32>
    %c0_13 = arith.constant 0 : index
    %c0_14 = arith.constant 0 : index
    %15 = vector.load %arg4[%c0_13, %c0_14] : memref<32x8xf32, #tpu.memory_space<vmem>>, vector<32x8xf32>
    %cst_15 = arith.constant dense<0.000000e+00> : vector<2x8xf32>
    %16 = tpu.matmul %1, %15, %cst_15 {dimension_numbers = #tpu.dot_dimension_numbers<[1], [0], [0], [1], [0, 0, 1, 1], [], []>} : vector<2x32xf32>, vector<32x8xf32>, vector<2x8xf32> -> vector<2x8xf32>
    %17 = vector.broadcast %3 : vector<1x8xf32> to vector<2x8xf32>
    %18 = arith.addf %16, %17 : vector<2x8xf32>
    %19 = math.tanh %18 : vector<2x8xf32>
    %cst_16 = arith.constant dense<0.000000e+00> : vector<2x32xf32>
    %20 = tpu.matmul %19, %10, %cst_16 {dimension_numbers = #tpu.dot_dimension_numbers<[1], [1], [0], [0], [0, 0, 1, 0], [], []>} : vector<2x8xf32>, vector<32x8xf32>, vector<2x32xf32> -> vector<2x32xf32>
    %21 = tpu.iota {dimensions = array<i32: 0>} : vector<2x32xi32>
    %22 = tpu.iota {dimensions = array<i32: 1>} : vector<2x32xi32>
    %c16_i32 = arith.constant 16 : i32
    %23 = vector.broadcast %c16_i32 : i32 to vector<2x32xi32>
    %24 = arith.muli %21, %23 : vector<2x32xi32>
    %25 = arith.cmpi sge, %22, %24 : vector<2x32xi32>
    %c16_i32_17 = arith.constant 16 : i32
    %26 = vector.broadcast %c16_i32_17 : i32 to vector<2x32xi32>
    %27 = arith.addi %24, %26 : vector<2x32xi32>
    %28 = arith.cmpi slt, %22, %27 : vector<2x32xi32>
    %29 = arith.andi %25, %28 : vector<2x32xi1>
    %cst_18 = arith.constant -1.000000e+30 : f32
    %30 = vector.broadcast %cst_18 : f32 to vector<2x32xf32>
    %31 = arith.select %29, %20, %30 : vector<2x32xi1>, vector<2x32xf32>
    %cst_19 = arith.constant dense<0xFF800000> : vector<2xf32>
    %32 = vector.multi_reduction <maximumf>, %31, %cst_19 [1] : vector<2x32xf32> to vector<2xf32>
    %33 = vector.shape_cast %32 : vector<2xf32> to vector<2x1xf32>
    %34 = vector.broadcast %33 : vector<2x1xf32> to vector<2x32xf32>
    %35 = arith.subf %31, %34 : vector<2x32xf32>
    %36 = math.exp %35 : vector<2x32xf32>
    %cst_20 = arith.constant dense<0.000000e+00> : vector<2xf32>
    %37 = vector.multi_reduction <add>, %36, %cst_20 [1] : vector<2x32xf32> to vector<2xf32>
    %38 = vector.shape_cast %37 : vector<2xf32> to vector<2x1xf32>
    %39 = vector.broadcast %38 : vector<2x1xf32> to vector<2x32xf32>
    %40 = arith.divf %36, %39 : vector<2x32xf32>
    %cst_21 = arith.constant dense<0.000000e+00> : vector<2x32xf32>
    %41 = tpu.matmul %40, %14, %cst_21 {dimension_numbers = #tpu.dot_dimension_numbers<[1], [0], [0], [1], [0, 0, 1, 1], [], []>} : vector<2x32xf32>, vector<32x32xf32>, vector<2x32xf32> -> vector<2x32xf32>
    %42 = arith.subf %1, %41 : vector<2x32xf32>
    %c0_22 = arith.constant 0 : index
    %c0_23 = arith.constant 0 : index
    %43 = vector.load %arg6[%c0_22, %c0_23] : memref<32x32xf32, #tpu.memory_space<vmem>>, vector<32x32xf32>
    %cst_24 = arith.constant dense<0.000000e+00> : vector<2x32xf32>
    %44 = tpu.matmul %42, %43, %cst_24 {dimension_numbers = #tpu.dot_dimension_numbers<[1], [0], [0], [1], [0, 0, 1, 1], [], []>} : vector<2x32xf32>, vector<32x32xf32>, vector<2x32xf32> -> vector<2x32xf32>
    %45 = vector.broadcast %5 : vector<1x32xf32> to vector<2x32xf32>
    %46 = arith.addf %44, %45 : vector<2x32xf32>
    %cst_25 = arith.constant 0.000000e+00 : f32
    %47 = vector.broadcast %cst_25 : f32 to vector<2x32xf32>
    %48 = arith.maximumf %46, %47 : vector<2x32xf32>
    %49 = arith.addf %1, %48 : vector<2x32xf32>
    %c0_26 = arith.constant 0 : index
    %c0_27 = arith.constant 0 : index
    %50 = vector.load %arg8[%c0_26, %c0_27] : memref<2x32xf32, #tpu.memory_space<vmem>>, vector<2x32xf32>
    tpu.vector_store %arg8[%c0_26, %c0_27], %49 {strides = array<i32>} : memref<2x32xf32, #tpu.memory_space<vmem>>, vector<2x32xf32>,
    %51 = tpu.iota {dimensions = array<i32: 0>} : vector<32x16xi32>
    %52 = tpu.iota {dimensions = array<i32: 1>} : vector<32x16xi32>
    %53 = arith.cmpi eq, %51, %52 : vector<32x16xi32>
    %c16_i32_28 = arith.constant 16 : i32
    %54 = vector.broadcast %c16_i32_28 : i32 to vector<32x16xi32>
    %55 = arith.addi %52, %54 : vector<32x16xi32>
    %56 = arith.cmpi eq, %51, %55 : vector<32x16xi32>
    %57 = arith.ori %53, %56 : vector<32x16xi1>
    %58 = arith.extui %57 : vector<32x16xi1> to vector<32x16xi32>
    %59 = arith.sitofp %58 : vector<32x16xi32> to vector<32x16xf32>
    %cst_29 = arith.constant dense<0.000000e+00> : vector<2x16xf32>
    %60 = tpu.matmul %40, %59, %cst_29 {dimension_numbers = #tpu.dot_dimension_numbers<[1], [0], [0], [1], [0, 0, 1, 1], [], []>} : vector<2x32xf32>, vector<32x16xf32>, vector<2x16xf32> -> vector<2x16xf32>
    %c0_30 = arith.constant 0 : index
    %c0_31 = arith.constant 0 : index
    %61 = vector.load %arg9[%c0_30, %c0_31] : memref<2x16xf32, #tpu.memory_space<vmem>>, vector<2x16xf32>
    tpu.vector_store %arg9[%c0_30, %c0_31], %60 {strides = array<i32>} : memref<2x16xf32, #tpu.memory_space<vmem>>, vector<2x16xf32>,
    return
  }
  func.func @transform_0(%arg0: i32) -> (i32, i32) {
    %c0_i32 = arith.constant 0 : i32
    %c0_i32_0 = arith.constant 0 : i32
    return %arg0, %c0_i32 : i32, i32
  }
  func.func @transform_1(%arg0: i32) -> (i32, i32) {
    %c0_i32 = arith.constant 0 : i32
    %c0_i32_0 = arith.constant 0 : i32
    return %arg0, %c0_i32 : i32, i32
  }
  func.func @transform_2(%arg0: i32) -> (i32, i32) {
    %c0_i32 = arith.constant 0 : i32
    %c0_i32_0 = arith.constant 0 : i32
    %c0_i32_1 = arith.constant 0 : i32
    return %c0_i32, %c0_i32_0 : i32, i32
  }
  func.func @transform_3(%arg0: i32) -> (i32, i32) {
    %c0_i32 = arith.constant 0 : i32
    %c0_i32_0 = arith.constant 0 : i32
    %c0_i32_1 = arith.constant 0 : i32
    return %c0_i32, %c0_i32_0 : i32, i32
  }
  func.func @transform_4(%arg0: i32) -> (i32, i32) {
    %c0_i32 = arith.constant 0 : i32
    %c0_i32_0 = arith.constant 0 : i32
    %c0_i32_1 = arith.constant 0 : i32
    return %c0_i32, %c0_i32_0 : i32, i32
  }
  func.func @transform_5(%arg0: i32) -> (i32, i32) {
    %c0_i32 = arith.constant 0 : i32
    %c0_i32_0 = arith.constant 0 : i32
    %c0_i32_1 = arith.constant 0 : i32
    return %c0_i32, %c0_i32_0 : i32, i32
  }
  func.func @transform_6(%arg0: i32) -> (i32, i32) {
    %c0_i32 = arith.constant 0 : i32
    %c0_i32_0 = arith.constant 0 : i32
    %c0_i32_1 = arith.constant 0 : i32
    return %c0_i32, %c0_i32_0 : i32, i32
  }
  func.func @transform_7(%arg0: i32) -> (i32, i32) {
    %c0_i32 = arith.constant 0 : i32
    %c0_i32_0 = arith.constant 0 : i32
    return %arg0, %c0_i32 : i32, i32
  }
  func.func @transform_8(%arg0: i32) -> (i32, i32) {
    %c0_i32 = arith.constant 0 : i32
    %c0_i32_0 = arith.constant 0 : i32
    return %arg0, %c0_i32 : i32, i32
  }
}

</mosaic_0001>

<bundles_post_ra>
// kernel: tpu_custom_call.1
= control target key start
LH: loop header
LB: loop body
LE: loop exit
PB: predicated region body
PF: predicated region fallthrough
CT: control target
= control target key end

     0   :  { %14 = vsyncpa [#allocation3], 0  ;;  %vm47_vm0 = vcmask 261120   ;;  %s1176_s0 = inlined_call_operand.vmem [shape: f32[32,32], index: 0, kind: input, shape index: {}]   ;;  %s1177_s1 = inlined_call_operand.vmem [shape: f32[2,32], index: 1, kind: input, shape index: {}]   ;;  %s1178_s2 = inlined_call_operand.vmem [shape: f32[32,8], index: 2, kind: input, shape index: {}]   ;;  %s1179_s3 = inlined_call_operand.vmem [shape: f32[32,8], index: 3, kind: input, shape index: {}]   ;;  %s1180_s4 = inlined_call_operand.vmem [shape: f32[32,32], index: 4, kind: input, shape index: {}]   ;;  %s1181_s5 = inlined_call_operand.vmem [shape: f32[32,32], index: 5, kind: input, shape index: {}]   ;;  %s1182_s6 = inlined_call_operand.vmem [shape: f32[4,32], index: 6, kind: input, shape index: {}]   ;;  %s1183_s7 = inlined_call_operand.hbm [shape: f32[2,32], index: 7, kind: output, shape index: {0}]   ;;  %s1184_s8 = inlined_call_operand.hbm [shape: f32[2,16], index: 8, kind: output, shape index: {1}]  }
   0x1   :  { %v39_v0 = vld [vmem:[%s1178_s2] sm:$0xff]  ;;  %v40_v1 = vld [vmem:[%s1178_s2 + $0x8] sm:$0xff]  ;;  %v41_v2 = vld [vmem:[%s1178_s2 + $0x10] sm:$0xff] }
   0x2   :  { %v867_v3 = vpack.c.bf16 %v40_v1, %v39_v0  ;;  %v42_v4 = vld [vmem:[%s1178_s2 + $0x18] sm:$0xff]  ;;  %v30_v5 = vld [vmem:[%s1176_s0] sm:$0xff] }
   0x3   :  { %v871_v6 = vpack.c.bf16 %v42_v4, %v41_v2  ;;  %792 = vmatprep.mubr.msk.f32.mxu0 %vm47_vm0, %v30_v5  ;;  %806 = vmatprep.mubr.msk.f32.mxu1 %vm47_vm0, %v30_v5 }
   0x4   :  { %868 = vmatprep.subr.bf16.mxu0 %v867_v3 }
   0x5   :  { %870 = vmatpush3.bf16.msra.mxu0 %v867_v3 }
   0x6   :  { %15 = vsyncpa [#allocation5], 0  ;;  %872 = vmatprep.subr.bf16.mxu0 %v871_v6  ;;  %v242_v7 = vld [vmem:[%s1179_s3] sm:$0xff]  ;;  %v243_v8 = vld [vmem:[%s1179_s3 + $0x8] sm:$0xff]  ;;  %v983_v12 = vmov 0.0|0.0   ;;  %vm984_vm1 = vmmov 0   ;;  %v410_v56 = vlaneseq }
   0x7   :  { %v31_v9 = vld [vmem:[%s1176_s0 + $0x8] sm:$0xff]  ;;  %v884_v10 = vpack.c.bf16 %v243_v8, %v242_v7  ;;  %v32_v11 = vld [vmem:[%s1176_s0 + $0x10] sm:$0xff]  ;;  %v245_v14 = vld [vmem:[%s1179_s3 + $0x18] sm:$0xff]  ;;  %v985_v17 = vmov 0.0   ;;  %vm324_vm2 = vcmask 64512   ;;  %vm420_vm7 = vcmask 254976  }
   0x8   :  { %v244_v13 = vld [vmem:[%s1179_s3 + $0x10] sm:$0xff]  ;;  %v33_v15 = vld [vmem:[%s1176_s0 + $0x18] sm:$0xff]  ;;  %v1082_v18 = vld [vmem:[%s1177_s1] sm:$0x3]  ;;  %v411_v57 = vshrl.u32 %v410_v56, 7  ;;  %v413_v59 = vand.u32 127, %v410_v56 }
   0x9   :  { %874 = vmatpush3.bf16.msra.mxu0 %v871_v6  ;;  %v887_v16 = vpack.c.bf16 %v245_v14, %v244_v13  ;;  %v149_v19 = vld [vmem:[%s1180_s4] sm:$0xff]  ;;  %v150_v20 = vld [vmem:[%s1180_s4 + $0x8] sm:$0xff]  ;;  %v151_v22 = vld [vmem:[%s1180_s4 + $0x10] sm:$0xff]  ;;  %s987_s25 = smov [#allocation4]  }
   0xa   :  { %883 = vmatprep.subr.bf16.mxu0 %v983_v12  ;;  %v875_v21 = vpack.c.bf16 %v150_v20, %v149_v19  ;;  %v152_v23 = vld [vmem:[%s1180_s4 + $0x18] sm:$0xff]  ;;  %v714_v25 = vld [vmem:[%s1182_s6] ss:$0 sm:$0xff]  ;;  %v724_v36 = vld [vmem:[%s1182_s6 + $0x1] ss:$0 sm:$0xff]  ;;  %v414_v58 = vmul.u32 16, %v411_v57  ;;  %vm593_vm8 = vcmp.eq.s32.totalorder %v411_v57, %v413_v59 }
   0xb   :  { %v879_v24 = vpack.c.bf16 %v152_v23, %v151_v22  ;;  %vm891_vm3 = vmpackc.low %vm324_vm2, %vm324_vm2  ;;  %v719_v45 = vld [vmem:[%s1182_s6 + $0x2] ss:$0 sm:$0xff]  ;;  %v590_v6 = vadd.s32 8, %v411_v57  ;;  %v591_v7 = vadd.s32 16, %v411_v57  ;;  %v592_v8 = vadd.s32 24, %v411_v57  ;;  %v507_v14 = vld [vmem:[%s1181_s5 + $0x8] sm:$0xff] }
   0xc   :  { %793 = vmatmul.mubr.msk.f32.vlgmr.msra.gmra.mrb[0].mxu0 %vm47_vm0, %v31_v9  ;;  %876 = vmatprep.subr.bf16.mxu1 %v875_v21  ;;  %v416_v60 = vadd.s32 16, %v414_v58  ;;  %vm415_vm4 = vcmp.ge.s32.totalorder %v413_v59, %v414_v58  ;;  %v506_v13 = vld [vmem:[%s1181_s5] sm:$0xff]  ;;  %v508_v20 = vld [vmem:[%s1181_s5 + $0x10] sm:$0xff]  ;;  %s702_s26 = sshll.u32 %s987_s25, 4  ;;  %s703_s26 = int_to_ptr.vmem [resolvable:$true] %s702_s26 }
   0xd   :  { %795 = vmatprep.mubr.msk.f32.mxu0 %vm47_vm0, %v32_v11  ;;  %885 = vmatpush3.bf16.msra.mxu0 %v884_v10  ;;  %vm594_vm9 = vcmp.eq.s32.totalorder %v590_v6, %v413_v59  ;;  %v986_v10 = vmov 1.0|1.0   ;;  %vm595_vm11 = vcmp.eq.s32.totalorder %v591_v7, %v413_v59  ;;  %vm596_vm12 = vcmp.eq.s32.totalorder %v592_v8, %v413_v59  ;;  %s935_s27 = scalar_lea.vmem %s703_s26, 32  ;;  %p940_p1 = scmp.lt.s32.totalorder %s703_s26, %s703_s26 }
   0xe   :  { %886 = vmatprep.subr.bf16.mxu0 %v983_v12  ;;  %878 = vmatpush3.bf16.msra.mxu1 %v875_v21  ;;  %vm417_vm5 = vcmp.lt.s32.totalorder %v413_v59, %v416_v60  ;;  %vm910_vm10 = vmpackc.low %vm594_vm9, %vm593_vm8  ;;  %v509_v21 = vld [vmem:[%s1181_s5 + $0x18] sm:$0xff]  ;;  %p936_p0 = scmp.ne.s32.totalorder %s703_s26, %s935_s27  ;;  %p941_p2 = scmp.lt.s32.totalorder %s935_s27, %s935_s27 }
   0xf   :  { %880 = vmatprep.subr.bf16.mxu1 %v879_v24  ;;  %vm418_vm6 = vmand %vm415_vm4, %vm417_vm5  ;;  %v907_v22 = vpack.c.bf16 %v509_v21, %v508_v20  ;;  %vm684_vm4 = vcmask 123904  }
  0x10   :  { %796 = vmatmul.mubr.msk.f32.gmra.mrb[2].mxu0 %vm47_vm0, %v33_v15  ;;  %p942_p3 = por %p941_p2, %p940_p1 }
  0x11   :  { %888 = vmatpush3.bf16.msra.mxu0 %v887_v16  ;;  %820 = vmatprep.mubr.msk.f32.mxu0 %vm984_vm1, %v985_v17  ;;  %v904_v16 = vpack.c.bf16 %v507_v14, %v506_v13 }
  0x12   :  { %897 = vmatprep.subr.bf16.mxu0 %v983_v12  ;;  %882 = vmatpush3.bf16.msra.mxu1 %v879_v24  ;;  %p943_p4 = pnand %p942_p3, %p936_p0 }
  0x13   :  { %889 = vmatprep.subr.bf16.mxu1 %v983_v12 }
  0x14   :  { %821 = vmatmul.mubr.msk.f32.vlgmr.msra.gmra.mrb[4].mxu0 %vm47_vm0, %v1082_v18 }
  0x15   :  { %842 = vmatprep.mubr.msk.f32.mxu0 %vm984_vm1, %v985_v17  ;;  %807 = vmatmul.mubr.msk.f32.vlgmr.msra.gmra.mrb[0].mxu1 %vm47_vm0, %v31_v9  ;;  %v597_v9 = vadd.s32 16, %v413_v59 }
  0x16   :  { %809 = vmatprep.mubr.msk.f32.mxu1 %vm47_vm0, %v32_v11 }
  0x17   :  { %vm600_vm13 = vcmp.eq.s32.totalorder %v591_v7, %v597_v9  ;;  %vm601_vm14 = vcmp.eq.s32.totalorder %v592_v8, %v597_v9 }
  0x18   :  { %vm604_vm15 = vmor %vm595_vm11, %vm600_vm13 }
  0x19   :  { %810 = vmatmul.mubr.msk.f32.gmra.mrb[2].mxu1 %vm47_vm0, %v33_v15 }
  0x1a   :  { %831 = vmatprep.mubr.msk.f32.mxu1 %vm984_vm1, %v985_v17 }
  0xdf   :  { %v794_v26 = vpop.f32.mrb[0].mxu0 }
  0xe0   :  { %v132_v27 = vadd.f32 %v794_v26, %v714_v25  ;;  %v126_v28 = vpop.f32.mrb[1].mxu0 }
  0xe1   :  { %v127_v29 = vadd.f32 %v714_v25, %v126_v28 }
  0xe2   :  { %921 = vtanh.f32 %v132_v27 }
  0xe3   :  { %923 = vtanh.f32 %v127_v29  ;;  %v797_v30 = vpop.f32.mrb[2].mxu0 }
  0xe4   :  { %v142_v31 = vadd.f32 %v797_v30, %v714_v25  ;;  %v136_v32 = vpop.f32.mrb[3].mxu0 }
  0xe5   :  { %v137_v33 = vadd.f32 %v714_v25, %v136_v32 }
  0xe6   :  { %925 = vtanh.f32 %v142_v31 }
  0xe7   :  { %927 = vtanh.f32 %v137_v33  ;;  %v319_v34 = vpop.f32.mrb[4].mxu0 }
  0xe8   :  { %v822_v35 = vpop.f32.mrb[5].mxu0  ;;  %v320_v39 = vadd.f32 %v724_v36, %v319_v34  ;;  %v808_v46 = vpop.f32.mrb[0].mxu1 }
  0xe9   :  { %v229_v47 = vadd.f32 %v808_v46, %v719_v45  ;;  %v223_v48 = vpop.f32.mrb[1].mxu1 }
  0xea   :  { %929 = vtanh.f32 %v320_v39  ;;  %v224_v49 = vadd.f32 %v719_v45, %v223_v48 }
  0xec   :  { %v922_v37 = vpop.eup %921  ;;  %v898_v50 = vpack.c.bf16 %v229_v47, %v224_v49  ;;  %v811_v51 = vpop.f32.mrb[2].mxu1 }
  0xed   :  { %v924_v38 = vpop.eup %923  ;;  %v239_v52 = vadd.f32 %v811_v51, %v719_v45  ;;  %v233_v53 = vpop.f32.mrb[3].mxu1 }
  0xee   :  { %v890_v40 = vpack.c.bf16 %v922_v37, %v924_v38  ;;  %899 = vmatpush3.bf16.msra.mxu0 %v898_v50  ;;  %v234_v54 = vadd.f32 %v719_v45, %v233_v53 }
  0xef   :  { %900 = vmatprep.subr.bf16.mxu0 %v983_v12 }
  0xf0   :  { %v926_v41 = vpop.eup %925  ;;  %892 = vmatpush3.bf16.xpose.msk.msra.mxu1 %vm891_vm3, %v890_v40  ;;  %v901_v55 = vpack.c.bf16 %v239_v52, %v234_v54 }
  0xf1   :  { %v928_v42 = vpop.eup %927  ;;  %893 = vmatprep.subr.bf16.mxu1 %v983_v12 }
  0xf2   :  { %v894_v43 = vpack.c.bf16 %v926_v41, %v928_v42  ;;  %902 = vmatpush3.bf16.msra.mxu0 %v901_v55 }
  0xf3   :  { %903 = vmatprep.subr.bf16.mxu0 %v983_v12 }
  0xf4   :  { %v930_v44 = vpop.eup %929 }
  0xf8   :  { %896 = vmatpush3.bf16.xpose.msk.msra.mxu1 %vm891_vm3, %v894_v43 }
  0xf9   :  { %909 = vmatprep.subr.bf16.mxu1 %v983_v12 }
  0xff   :  { %832 = vmatmul.mubr.msk.f32.vlgmr.msra.gmra.mrb[4].mxu1 %vm324_vm2, %v930_v44  ;;  %vm605_vm2 = vmor %vm596_vm12, %vm601_vm14 }
 0x100   :  { %864 = vmatprep.mubr.msk.f32.mxu1 %vm984_vm1, %v985_v17  ;;  %911 = vmatpush3.bf16.msk.msra.mxu1 %vm910_vm10, %v986_v10  ;;  %vm913_vm3 = vmpackc.low %vm605_vm2, %vm604_vm15 }
 0x101   :  { %912 = vmatprep.subr.bf16.mxu1 %v983_v12 }
 0x104   :  { %914 = vmatpush3.bf16.msk.msra.mxu1 %vm913_vm3, %v986_v10 }
 0x1d2   :  { %v406_v61 = vpop.f32.mrb[4].mxu1 }
 0x1d3   :  { %v419_v62 = vsel %vm418_vm6, %v406_v61, -1e+30  ;;  %v833_v63 = vpop.f32.mrb[5].mxu1 }
 0x1d4   :  { %v421_v0 = vsel %vm420_vm7, %v419_v62, -inf }
 0x1d5   :  { %422 = vmax.xlane.f32.xlu0 %v421_v0 }
 0x262   :  { %v423_v1 = vpop.xlane.xlu0 %422 }
 0x263   :  { %v424_v2 = vsub.f32 %v419_v62, %v423_v1 }
 0x265   :  { %v425_v3 = vmul.f32 1.442695, %v424_v2 }
 0x267   :  { %931 = vpow2.f32 %v425_v3 }
 0x271   :  { %v932_v4 = vpop.eup %931 }
 0x272   :  { %v427_v5 = vsel %vm420_vm7, %v932_v4, 0.0 }
 0x273   :  { %428 = vadd.xlane.f32.xlu0 %v427_v5 }
 0x300   :  { %v429_v11 = vpop.xlane.xlu0 %428 }
 0x301   :  { %933 = vrcp.f32 %v429_v11 }
 0x30b   :  { %v934_v15 = vpop.eup %933 }
 0x30c   :  { %v431_v19 = vmul.f32 %v934_v15, %v932_v4 }
 0x30e   :  { %843 = vmatmul.mubr.msk.f32.vlgmr.msra.gmra.mrb[6].mxu0 %vm47_vm0, %v431_v19  ;;  %865 = vmatmul.mubr.msk.f32.vlgmr.msra.gmra.mrb[6].mxu1 %vm47_vm0, %v431_v19 }
 0x30f   :  { %905 = vmatpush3.bf16.msra.mxu0 %v904_v16  ;;  %853 = vmatprep.mubr.msk.f32.mxu0 %vm984_vm1, %v985_v17 }
 0x310   :  { %906 = vmatprep.subr.bf16.mxu0 %v983_v12 }
 0x313   :  { %908 = vmatpush3.bf16.msra.mxu0 %v907_v22 }
 0x3e1   :  { %v501_v23 = vpop.f32.mrb[6].mxu0  ;;  %v680_v24 = vpop.f32.mrb[6].mxu1 }
 0x3e2   :  { %v505_v25 = vsub.f32 %v1082_v18, %v501_v23  ;;  %685 = vst.msk [vmem:[#allocation4] sm:$0x3] %vm684_vm4, %v680_v24  ;;  %v844_v26 = vpop.f32.mrb[7].mxu0  ;;  %v866_v17 = vpop.f32.mrb[7].mxu1 }
 0x3e4   :  { %854 = vmatmul.mubr.msk.f32.vlgmr.msra.gmra.mrb[8].mxu0 %vm47_vm0, %v505_v25 }
 0x3e5   :  { %946 = shalt.err (!%p943_p4)
}
 0x3e6   :  { %s947_s28 = scalar_lea.hbm %s1184_s8, 32 }
 0x3e7   :  { %p948_p5 = scmp.ne.s32.totalorder %s1184_s8, %s947_s28  ;;  %p951_p6 = scmp.lt.u32.totalorder %s947_s28, %s1184_s8 }
 0x3e9   :  { %p953_p7 = pnand %p951_p6, %p948_p5 }
 0x3eb   :  { %956 = shalt.err (!%p953_p7)
}
 0x3ec   :  { %705 = dma.vmem_to_hbm [thread:$0]  %s703_s26, 32, %s1184_s8, [#allocation5]   ;;  %v732_v12 = vld [vmem:[%s1182_s6 + $0x3] ss:$0 sm:$0xff] }
 0x3ed   :  { %s988_s13 = smov [#allocation2]  }
 0x3ee   :  { %s692_s14 = sshll.u32 %s988_s13, 4  ;;  %s693_s14 = int_to_ptr.vmem [resolvable:$true] %s692_s14 }
 0x3ef   :  { %s957_s4 = scalar_lea.vmem %s693_s14, 32  ;;  %p962_p9 = scmp.lt.s32.totalorder %s693_s14, %s693_s14 }
 0x3f0   :  { %p958_p8 = scmp.ne.s32.totalorder %s693_s14, %s957_s4  ;;  %p963_p10 = scmp.lt.s32.totalorder %s957_s4, %s957_s4 }
 0x3f2   :  { %p964_p11 = por %p963_p10, %p962_p9 }
 0x3f4   :  { %p965_p12 = pnand %p964_p11, %p958_p8 }
 0x4b7   :  { %v583_v27 = vpop.f32.mrb[8].mxu0 }
 0x4b8   :  { %v584_v28 = vadd.f32 %v732_v12, %v583_v27  ;;  %v855_v29 = vpop.f32.mrb[9].mxu0 }
 0x4ba   :  { %v587_v30 = vmax.f32 %v584_v28, 0.0 }
 0x4bc   :  { %v588_v31 = vadd.f32 %v587_v30, %v1082_v18 }
 0x4be   :  { %589 = vst.msk [vmem:[#allocation2] sm:$0x3] %vm420_vm7, %v588_v31 }
 0x4bf   :  { %968 = shalt.err (!%p965_p12)
}
 0x4c0   :  { %s969_s15 = scalar_lea.hbm %s1183_s7, 32 }
 0x4c1   :  { %p970_p13 = scmp.ne.s32.totalorder %s1183_s7, %s969_s15  ;;  %p973_p0 = scmp.lt.u32.totalorder %s969_s15, %s1183_s7 }
 0x4c3   :  { %p975_p1 = pnand %p973_p0, %p970_p13 }
 0x4c5   :  { %978 = shalt.err (!%p975_p1)
}
 0x4c6   :  { %695 = dma.vmem_to_hbm [thread:$0]  %s693_s14, 32, %s1183_s7, [#allocation3]  }
 0x4c7   :  { %979 = dma.done.wait [#allocation3], 32  }
 0x4c8   :  { %980 = vsyncadd [#allocation3], 4294967264 }
 0x4c9   :  { %981 = dma.done.wait [#allocation5], 32  }
 0x4ca   :  { %982 = vsyncadd [#allocation5], 4294967264 }
 0x4cb   :  { %712 = vsyncpa [#allocation3], 1 }
 0x4cc   :  { %713 = vsyncpa [#allocation5], 1 }

</bundles_post_ra>
